<compile_context>
chip_gen: v6e
topology: v6e:2x2x1
jax: 0.10.0
libtpu: 0.0.40
codegen_flags: <defaults>
</compile_context>

<pallas_src>
import functools
import math

import jax
import jax.numpy as jnp
import numpy as np
from jax.experimental import pallas as pl
from jax.experimental.pallas import tpu as pltpu


# ---------------------------------------------------------------------------
# Host-side weight construction (sizes static at __call__ time).
# ---------------------------------------------------------------------------
def _nearest_matrix(out_size, in_size):
    # PyTorch 'nearest': src = floor(dst * scale) with scale = in/out in f32.
    scale = np.float32(in_size) / np.float32(out_size)
    dst = np.arange(out_size, dtype=np.float32)
    src = np.clip(np.floor(dst * scale).astype(np.int64), 0, in_size - 1)
    w = np.zeros((out_size, in_size), dtype=np.float32)
    w[np.arange(out_size), src] = 1.0
    return w  # (out, in)


def _linear_matrix(out_size, in_size, align_corners):
    dst = np.arange(out_size, dtype=np.float64)
    if align_corners:
        if out_size == 1:
            src = np.zeros((out_size,), dtype=np.float64)  # PyTorch: scale==0
        else:
            src = dst * (in_size - 1) / (out_size - 1)
    else:
        src = (dst + 0.5) * (in_size / out_size) - 0.5
        src = np.maximum(src, 0.0)
    lo = np.clip(np.floor(src).astype(np.int64), 0, in_size - 1)
    hi = np.minimum(lo + 1, in_size - 1)
    frac = np.clip(src - lo, 0.0, 1.0)
    w = np.zeros((out_size, in_size), dtype=np.float64)
    w[np.arange(out_size), lo] += 1.0 - frac
    w[np.arange(out_size), hi] += frac
    return w.astype(np.float32)  # (out, in)


# ---------------------------------------------------------------------------
# VMEM sizing (tile-padding aware, generation aware).
# ---------------------------------------------------------------------------
def _round_up(x, m):
    return -(-x // m) * m


def _tile_bytes(rows, cols, itemsize):
    sub = max(8, 32 // max(itemsize, 1))          # 8 (f32) / 16 (bf16) / 32 (i8)
    return _round_up(max(rows, 1), sub) * _round_up(max(cols, 1), 128) * itemsize


def _vmem_capacity_bytes():
    try:
        info = pltpu.get_tpu_info()
        cap = getattr(info, "vmem_capacity_bytes", None)
        if cap:
            return int(cap)
    except Exception:
        pass
    return 64 * 1024 * 1024  # conservative fallback (v7x per-TC)


def _choose_block_p(nplanes, h_in, w_in, h_out, w_out,
                    in_item, out_item, mm_item, vmem_cap):
    budget = max(4 << 20, int(vmem_cap * 0.30))
    per_plane = (
        2 * _tile_bytes(h_in, w_in, in_item)        # input block, double-buffered
        + 2 * _tile_bytes(h_out, w_out, out_item)   # output block, double-buffered
        + _tile_bytes(h_in, w_in, mm_item)          # in-kernel dtype-cast copy
        + _tile_bytes(h_in, w_out, 4)               # xw (f32 accumulator)
        + _tile_bytes(h_in, w_out, mm_item)         # xw cast to matmul dtype
        + _tile_bytes(w_out, h_in, mm_item)         # xw relayout (lane-padded!)
        + _tile_bytes(w_out, h_out, 4)              # row-resampled f32
        + _tile_bytes(h_out, w_out, 4)              # result f32 before store cast
    )
    p = max(1, budget // per_plane)
    if p >= nplanes:
        return int(nplanes)
    # Keep block second-to-last dims (block_p*H) divisible by 8 sublanes.
    def _mult(h):
        return 8 // math.gcd(h, 8)
    m = (_mult(h_in) * _mult(h_out)) // math.gcd(_mult(h_in), _mult(h_out))
    p = max(m, (p // m) * m)
    return int(min(p, nplanes))


# ---------------------------------------------------------------------------
# Kernel: resample a block of `planes` planes per grid step.
# ---------------------------------------------------------------------------
def _upsample_kernel(x_ref, c_ref, rt_ref, o_ref, *, planes, h_in, h_out, row_mode):
    # x_ref: (planes*H_in, W_in)   c_ref: (W_in, W_out)   rt_ref: (H_in, H_out)
    # o_ref: (planes*H_out, W_out)
    mm_dtype = c_ref.dtype
    w_out = o_ref.shape[-1]

    x = x_ref[...]
    if x.dtype != mm_dtype:
        x = x.astype(mm_dtype)

    # (1) Column resample: one big MXU matmul, M = planes*H_in, K = W_in.
    xw = jnp.dot(x, c_ref[...], preferred_element_type=jnp.float32)
    xw = xw.astype(mm_dtype)                      # bf16 path stays bf16 (P half)
    xw = xw.reshape(planes, h_in, w_out)

    if row_mode == "wide":
        # (2) Row resample as ONE big matmul: move H_in into the K dim with a
        #     per-plane minor-dim relayout (XLU), M = planes*W_out, N = H_out.
        xw_t = jnp.transpose(xw, (0, 2, 1)).reshape(planes * w_out, h_in)
        yr = jnp.dot(xw_t, rt_ref[...], preferred_element_type=jnp.float32)
        out = jnp.transpose(yr.reshape(planes, w_out, h_out), (0, 2, 1))
        out = out.reshape(planes * h_out, w_out)
    else:
        # Fallback: per-plane batched matmul (smaller MXU shapes, but a lowering
        # pattern supported on every Mosaic toolchain).
        r3 = jnp.broadcast_to(rt_ref[...].T[None], (planes, h_out, h_in))
        out = jax.lax.dot_general(
            r3, xw,
            dimension_numbers=(((2,), (1,)), ((0,), (0,))),
            preferred_element_type=jnp.float32)   # (planes, H_out, W_out)
        out = out.reshape(planes * h_out, w_out)

    o_ref[...] = out.astype(o_ref.dtype)


_ROW_MODE = ["wide"]  # flips to "batched" once if the wide relayout won't lower


def _pallas_resample(x2d, c_mat, rt_mat, nplanes, h_in, h_out, out_dtype):
    # x2d: (nplanes*H_in, W_in); returns (nplanes*H_out, W_out)
    w_in = x2d.shape[-1]
    w_out = c_mat.shape[-1]
    in_item = x2d.dtype.itemsize
    out_item = jnp.dtype(out_dtype).itemsize
    mm_item = jnp.dtype(c_mat.dtype).itemsize

    vmem_cap = _vmem_capacity_bytes()
    block_p = _choose_block_p(nplanes, h_in, w_in, h_out, w_out,
                              in_item, out_item, mm_item, vmem_cap)
    grid = (pl.cdiv(nplanes, block_p),)
    vmem_limit = max(16 << 20, min(vmem_cap // 2, 100 << 20))

    flops = 2 * nplanes * h_in * w_out * (w_in + h_out)
    bytes_accessed = (x2d.size * in_item
                      + nplanes * h_out * w_out * out_item
                      + (c_mat.size + rt_mat.size) * mm_item)

    def build(row_mode):
        kernel = functools.partial(_upsample_kernel, planes=block_p,
                                   h_in=h_in, h_out=h_out, row_mode=row_mode)
        return pl.pallas_call(
            kernel,
            out_shape=jax.ShapeDtypeStruct((nplanes * h_out, w_out), out_dtype),
            grid=grid,
            in_specs=[
                pl.BlockSpec((block_p * h_in, w_in), lambda i: (i, 0)),
                pl.BlockSpec((w_in, w_out), lambda i: (0, 0)),
                pl.BlockSpec((h_in, h_out), lambda i: (0, 0)),
            ],
            out_specs=pl.BlockSpec((block_p * h_out, w_out), lambda i: (i, 0)),
            compiler_params=pltpu.CompilerParams(
                dimension_semantics=("parallel",),
                vmem_limit_bytes=int(vmem_limit)),
            cost_estimate=pl.CostEstimate(flops=int(flops), transcendentals=0,
                                          bytes_accessed=int(bytes_accessed)),
        )(x2d, c_mat, rt_mat)

    if _ROW_MODE[0] == "wide":
        try:
            return build("wide")
        except Exception:
            _ROW_MODE[0] = "batched"
    return build("batched")


# ---------------------------------------------------------------------------
# Module equivalent
# ---------------------------------------------------------------------------
class Upsample:
    def __init__(self, size=None, scale_factor=None, scale_bias=0,
                 mode='nearest', align_corners=None):
        self.size = size
        self.scale_factor = scale_factor
        self.scale_bias = scale_bias
        self.mode = mode
        self.align_corners = align_corners
        assert (self.size is None) ^ (self.scale_factor is None)
        # TODO(synk): only 'nearest' and 'bilinear' F.interpolate modes are
        # implemented (bicubic / area / trilinear / nearest-exact are not).
        assert mode in ('nearest', 'bilinear')

    def __call__(self, x):
        n, c, h, w = x.shape
        if self.size:
            h_out, w_out = self.size
        else:
            h_out = int(h * self.scale_factor + self.scale_bias)
            w_out = int(w * self.scale_factor + self.scale_bias)

        if self.mode == 'nearest':
            r_np = _nearest_matrix(h_out, h)          # (H_out, H_in)
            c_np = _nearest_matrix(w_out, w).T        # (W_in, W_out)
        else:  # bilinear
            ac = bool(self.align_corners)
            r_np = _linear_matrix(h_out, h, ac)
            c_np = _linear_matrix(w_out, w, ac).T

        # bf16 inputs: bf16 weights for single-pass MXU (nearest weights are
        # exact 0/1 in bf16); everything else runs in f32. Accumulation is f32.
        mm_dtype = jnp.bfloat16 if x.dtype == jnp.bfloat16 else jnp.float32
        c_mat = jnp.asarray(np.ascontiguousarray(c_np), dtype=mm_dtype)
        rt_mat = jnp.asarray(np.ascontiguousarray(r_np.T), dtype=mm_dtype)

        x2d = x.reshape(n * c * h, w)                 # free row-major view
        out2d = _pallas_resample(x2d, c_mat, rt_mat, n * c, h, h_out, x.dtype)
        return out2d.reshape(n, c, h_out, w_out)


# ---------------------------------------------------------------------------
if __name__ == "__main__":
    key = jax.random.PRNGKey(0)
    x = jax.random.normal(key, (2, 4, 16, 16), dtype=jnp.float32)

    # nearest, scale_factor=2 (module defaults: mode='nearest', scale_bias=0)
    up = Upsample(scale_factor=2)
    y = jax.block_until_ready(up(x))
    ref = np.repeat(np.repeat(np.asarray(x), 2, axis=2), 2, axis=3)
    np.testing.assert_allclose(np.asarray(y), ref, rtol=1e-6, atol=1e-6)
    assert y.shape == (2, 4, 32, 32)

    # bilinear, explicit size, align_corners=False
    up2 = Upsample(size=(24, 40), mode='bilinear', align_corners=False)
    y2 = jax.block_until_ready(up2(x))
    assert y2.shape == (2, 4, 24, 40)
    # bilinear of a constant image must stay constant (weight rows sum to 1)
    xc = jnp.full((1, 1, 16, 16), 3.5, dtype=jnp.float32)
    yc = jax.block_until_ready(up2(xc))
    np.testing.assert_allclose(np.asarray(yc), 3.5, rtol=1e-5, atol=1e-5)

    # bilinear, align_corners=True reproduces a separable linear ramp exactly
    up3 = Upsample(scale_factor=2, mode='bilinear', align_corners=True)
    y3 = jax.block_until_ready(up3(x))
    assert y3.shape == (2, 4, 32, 32)
    ramp = (2.0 * jnp.arange(16, dtype=jnp.float32)[:, None]
            + jnp.arange(16, dtype=jnp.float32)[None, :]).reshape(1, 1, 16, 16)
    yr = jax.block_until_ready(up3(ramp))
    s = np.arange(32, dtype=np.float64) * 15.0 / 31.0
    ramp_ref = 2.0 * s[:, None] + s[None, :]
    np.testing.assert_allclose(np.asarray(yr)[0, 0], ramp_ref, rtol=1e-5, atol=1e-4)

    # bf16 nearest path (bf16 weights, exact 0/1 selection)
    xb = x.astype(jnp.bfloat16)
    yb = jax.block_until_ready(Upsample(scale_factor=2)(xb))
    refb = np.repeat(np.repeat(np.asarray(xb.astype(jnp.float32)), 2, axis=2),
                     2, axis=3)
    np.testing.assert_allclose(np.asarray(yb.astype(jnp.float32)), refb,
                               rtol=1e-6, atol=1e-6)

    print("KERNEL_OK")
</pallas_src>

<mosaic_0001>
module attributes {stable_mosaic.version = 11 : i64} {
  func.func @_upsample_kernel(%arg0: i32, %arg1: memref<128x16xf32, #tpu.memory_space<vmem>>, %arg2: memref<16x32xf32, #tpu.memory_space<vmem>>, %arg3: memref<16x32xf32, #tpu.memory_space<vmem>>, %arg4: memref<256x32xf32, #tpu.memory_space<vmem>>) attributes {dimension_semantics = [#tpu.dimension_semantics<parallel>], iteration_bounds = array<i64: 1>, scalar_prefetch = 0 : i64, scratch_operands = 0 : i64, tpu.core_type = #tpu.core_type<tc>, window_params = [{transform_indices = @transform_0, window_bounds = array<i64: 128, 16>}, {pipeline_mode = #tpu.pipeline_mode<synchronous>, transform_indices = @transform_1, window_bounds = array<i64: 16, 32>}, {pipeline_mode = #tpu.pipeline_mode<synchronous>, transform_indices = @transform_2, window_bounds = array<i64: 16, 32>}, {transform_indices = @transform_3, window_bounds = array<i64: 256, 32>}]} {
    %c0 = arith.constant 0 : index
    %c0_0 = arith.constant 0 : index
    %0 = vector.load %arg1[%c0, %c0_0] : memref<128x16xf32, #tpu.memory_space<vmem>>, vector<128x16xf32>
    %c0_1 = arith.constant 0 : index
    %c0_2 = arith.constant 0 : index
    %1 = vector.load %arg2[%c0_1, %c0_2] : memref<16x32xf32, #tpu.memory_space<vmem>>, vector<16x32xf32>
    %cst = arith.constant dense<0.000000e+00> : vector<128x32xf32>
    %2 = tpu.matmul %0, %1, %cst {dimension_numbers = #tpu.dot_dimension_numbers<[1], [0], [0], [1], [0, 0, 1, 1], [], []>} : vector<128x16xf32>, vector<16x32xf32>, vector<128x32xf32> -> vector<128x32xf32>
    %3 = vector.shape_cast %2 : vector<128x32xf32> to vector<8x16x32xf32>
    %4 = tpu.transpose %3, [0, 2, 1] : vector<8x16x32xf32> -> vector<8x32x16xf32>
    %5 = vector.shape_cast %4 : vector<8x32x16xf32> to vector<256x16xf32>
    %c0_3 = arith.constant 0 : index
    %c0_4 = arith.constant 0 : index
    %6 = vector.load %arg3[%c0_3, %c0_4] : memref<16x32xf32, #tpu.memory_space<vmem>>, vector<16x32xf32>
    %cst_5 = arith.constant dense<0.000000e+00> : vector<256x32xf32>
    %7 = tpu.matmul %5, %6, %cst_5 {dimension_numbers = #tpu.dot_dimension_numbers<[1], [0], [0], [1], [0, 0, 1, 1], [], []>} : vector<256x16xf32>, vector<16x32xf32>, vector<256x32xf32> -> vector<256x32xf32>
    %8 = vector.shape_cast %7 : vector<256x32xf32> to vector<8x32x32xf32>
    %9 = tpu.transpose %8, [0, 2, 1] : vector<8x32x32xf32> -> vector<8x32x32xf32>
    %10 = vector.shape_cast %9 : vector<8x32x32xf32> to vector<256x32xf32>
    %c0_6 = arith.constant 0 : index
    %c0_7 = arith.constant 0 : index
    %11 = vector.load %arg4[%c0_6, %c0_7] : memref<256x32xf32, #tpu.memory_space<vmem>>, vector<256x32xf32>
    tpu.vector_store %arg4[%c0_6, %c0_7], %10 {strides = array<i32>} : memref<256x32xf32, #tpu.memory_space<vmem>>, vector<256x32xf32>,
    return
  }
  func.func @transform_0(%arg0: i32) -> (i32, i32) {
    %c0_i32 = arith.constant 0 : i32
    %c0_i32_0 = arith.constant 0 : i32
    return %arg0, %c0_i32 : i32, i32
  }
  func.func @transform_1(%arg0: i32) -> (i32, i32) {
    %c0_i32 = arith.constant 0 : i32
    %c0_i32_0 = arith.constant 0 : i32
    %c0_i32_1 = arith.constant 0 : i32
    return %c0_i32, %c0_i32_0 : i32, i32
  }
  func.func @transform_2(%arg0: i32) -> (i32, i32) {
    %c0_i32 = arith.constant 0 : i32
    %c0_i32_0 = arith.constant 0 : i32
    %c0_i32_1 = arith.constant 0 : i32
    return %c0_i32, %c0_i32_0 : i32, i32
  }
  func.func @transform_3(%arg0: i32) -> (i32, i32) {
    %c0_i32 = arith.constant 0 : i32
    %c0_i32_0 = arith.constant 0 : i32
    return %arg0, %c0_i32 : i32, i32
  }
}

module attributes {stable_mosaic.version = 11 : i64} {
  func.func @_upsample_kernel(%arg0: i32, %arg1: memref<128x16xf32, #tpu.memory_space<vmem>>, %arg2: memref<16x32xf32, #tpu.memory_space<vmem>>, %arg3: memref<16x32xf32, #tpu.memory_space<vmem>>, %arg4: memref<256x32xf32, #tpu.memory_space<vmem>>) attributes {dimension_semantics = [#tpu.dimension_semantics<parallel>], iteration_bounds = array<i64: 1>, scalar_prefetch = 0 : i64, scratch_operands = 0 : i64, tpu.core_type = #tpu.core_type<tc>, window_params = [{transform_indices = @transform_0, window_bounds = array<i64: 128, 16>}, {pipeline_mode = #tpu.pipeline_mode<synchronous>, transform_indices = @transform_1, window_bounds = array<i64: 16, 32>}, {pipeline_mode = #tpu.pipeline_mode<synchronous>, transform_indices = @transform_2, window_bounds = array<i64: 16, 32>}, {transform_indices = @transform_3, window_bounds = array<i64: 256, 32>}]} {
    %c0 = arith.constant 0 : index
    %c0_0 = arith.constant 0 : index
    %0 = vector.load %arg1[%c0, %c0_0] : memref<128x16xf32, #tpu.memory_space<vmem>>, vector<128x16xf32>
    %c0_1 = arith.constant 0 : index
    %c0_2 = arith.constant 0 : index
    %1 = vector.load %arg2[%c0_1, %c0_2] : memref<16x32xf32, #tpu.memory_space<vmem>>, vector<16x32xf32>
    %cst = arith.constant dense<0.000000e+00> : vector<128x32xf32>
    %2 = tpu.matmul %0, %1, %cst {dimension_numbers = #tpu.dot_dimension_numbers<[1], [0], [0], [1], [0, 0, 1, 1], [], []>} : vector<128x16xf32>, vector<16x32xf32>, vector<128x32xf32> -> vector<128x32xf32>
    %3 = vector.shape_cast %2 : vector<128x32xf32> to vector<8x16x32xf32>
    %c0_3 = arith.constant 0 : index
    %c0_4 = arith.constant 0 : index
    %4 = vector.load %arg3[%c0_3, %c0_4] : memref<16x32xf32, #tpu.memory_space<vmem>>, vector<16x32xf32>
    %5 = tpu.transpose %4, [1, 0] : vector<16x32xf32> -> vector<32x16xf32>
    %6 = vector.shape_cast %5 : vector<32x16xf32> to vector<1x32x16xf32>
    %7 = vector.shape_cast %6 : vector<1x32x16xf32> to vector<1x32x16xf32>
    %8 = vector.broadcast %7 : vector<1x32x16xf32> to vector<8x32x16xf32>
    %cst_5 = arith.constant dense<0.000000e+00> : vector<8x32x32xf32>
    %9 = tpu.matmul %8, %3, %cst_5 {dimension_numbers = #tpu.dot_dimension_numbers<[2], [1], [1], [2], [0, 0, 0, 1, 1, 2], [0], [0]>} : vector<8x32x16xf32>, vector<8x16x32xf32>, vector<8x32x32xf32> -> vector<8x32x32xf32>
    %10 = vector.shape_cast %9 : vector<8x32x32xf32> to vector<256x32xf32>
    %c0_6 = arith.constant 0 : index
    %c0_7 = arith.constant 0 : index
    %11 = vector.load %arg4[%c0_6, %c0_7] : memref<256x32xf32, #tpu.memory_space<vmem>>, vector<256x32xf32>
    tpu.vector_store %arg4[%c0_6, %c0_7], %10 {strides = array<i32>} : memref<256x32xf32, #tpu.memory_space<vmem>>, vector<256x32xf32>,
    return
  }
  func.func @transform_0(%arg0: i32) -> (i32, i32) {
    %c0_i32 = arith.constant 0 : i32
    %c0_i32_0 = arith.constant 0 : i32
    return %arg0, %c0_i32 : i32, i32
  }
  func.func @transform_1(%arg0: i32) -> (i32, i32) {
    %c0_i32 = arith.constant 0 : i32
    %c0_i32_0 = arith.constant 0 : i32
    %c0_i32_1 = arith.constant 0 : i32
    return %c0_i32, %c0_i32_0 : i32, i32
  }
  func.func @transform_2(%arg0: i32) -> (i32, i32) {
    %c0_i32 = arith.constant 0 : i32
    %c0_i32_0 = arith.constant 0 : i32
    %c0_i32_1 = arith.constant 0 : i32
    return %c0_i32, %c0_i32_0 : i32, i32
  }
  func.func @transform_3(%arg0: i32) -> (i32, i32) {
    %c0_i32 = arith.constant 0 : i32
    %c0_i32_0 = arith.constant 0 : i32
    return %arg0, %c0_i32 : i32, i32
  }
}

</mosaic_0001>

<bundles_post_ra>
// kernel: tpu_custom_call.1
= control target key start
LH: loop header
LB: loop body
LE: loop exit
PB: predicated region body
PF: predicated region fallthrough
CT: control target
= control target key end

     0   :  { %vm32_vm0 = vcmask 130048   ;;  %vm1061_vm1 = vcmask 261120   ;;  %s1539_s1 = inlined_call_operand.vmem [shape: f32[16,32], index: 1, kind: input, shape index: {}]   ;;  %s1540_s0 = inlined_call_operand.vmem [shape: f32[128,16], index: 0, kind: input, shape index: {}]   ;;  %s1541_s2 = inlined_call_operand.vmem [shape: f32[16,32], index: 2, kind: input, shape index: {}]   ;;  %s1542_s3 = inlined_call_operand.vmem [shape: f32[256,32], index: 3, kind: output, shape index: {}]  }
   0x1   :  { %v31_v0 = vld [vmem:[%s1539_s1 + $0x8] sm:$0xff]  ;;  %v30_v1 = vld [vmem:[%s1539_s1] sm:$0xff]  ;;  %v16_v4 = vld [vmem:[%s1540_s0 + $0x10] sm:$0xff] }
   0x2   :  { %v14_v2 = vld [vmem:[%s1540_s0] sm:$0xff]  ;;  %1198 = vmatprep.subr.mxu0 %v31_v0  ;;  %v15_v3 = vld [vmem:[%s1540_s0 + $0x8] sm:$0xff]  ;;  %v17_v5 = vld [vmem:[%s1540_s0 + $0x18] sm:$0xff] }
   0x3   :  { %1202 = vmatprep.mubr.msk.f32.mxu0 %vm32_vm0, %v14_v2  ;;  %1199 = vmatpush3.msra.mxu0 %v31_v0  ;;  %v18_v6 = vld [vmem:[%s1540_s0 + $0x20] sm:$0xff]  ;;  %v19_v7 = vld [vmem:[%s1540_s0 + $0x28] sm:$0xff]  ;;  %v20_v8 = vld [vmem:[%s1540_s0 + $0x30] sm:$0xff] }
   0x4   :  { %1200 = vmatprep.subr.mxu0 %v30_v1  ;;  %v21_v9 = vld [vmem:[%s1540_s0 + $0x38] sm:$0xff]  ;;  %v22_v10 = vld [vmem:[%s1540_s0 + $0x40] sm:$0xff]  ;;  %v23_v11 = vld [vmem:[%s1540_s0 + $0x48] sm:$0xff] }
   0x5   :  { %1201 = vmatpush3.msra.mxu0 %v30_v1  ;;  %v24_v12 = vld [vmem:[%s1540_s0 + $0x50] sm:$0xff]  ;;  %v25_v13 = vld [vmem:[%s1540_s0 + $0x58] sm:$0xff]  ;;  %v26_v14 = vld [vmem:[%s1540_s0 + $0x60] sm:$0xff] }
   0x6   :  { %1203 = vmatmul.mubr.msk.f32.vlgmr.msra.gmra.mxu0 %vm32_vm0, %v15_v3  ;;  %v27_v15 = vld [vmem:[%s1540_s0 + $0x68] sm:$0xff]  ;;  %v28_v16 = vld [vmem:[%s1540_s0 + $0x70] sm:$0xff]  ;;  %v29_v17 = vld [vmem:[%s1540_s0 + $0x78] sm:$0xff] }
   0x7   :  { %1205 = vmatprep.mubr.msk.f32.mxu0 %vm32_vm0, %v16_v4  ;;  %v483_v22 = vld [vmem:[%s1541_s2 + $0x8] sm:$0xff]  ;;  %v482_v24 = vld [vmem:[%s1541_s2] sm:$0xff] }
   0x8   :  { %1278 = vmatprep.subr.mxu1 %v483_v22  ;;  %1226 = vmatprep.subr.mxu0 %v483_v22 }
   0x9   :  { %1280 = vmatpush3.msra.mxu1 %v483_v22  ;;  %1227 = vmatpush3.msra.mxu0 %v483_v22 }
   0xa   :  { %1206 = vmatmul.mubr.msk.f32.gmra.mxu0 %vm32_vm0, %v17_v5  ;;  %1279 = vmatprep.subr.mxu1 %v482_v24 }
   0xb   :  { %1208 = vmatprep.mubr.msk.f32.mxu0 %vm32_vm0, %v18_v6  ;;  %1228 = vmatprep.subr.mxu0 %v482_v24 }
   0xc   :  { %1281 = vmatpush3.msra.mxu1 %v482_v24  ;;  %1229 = vmatpush3.msra.mxu0 %v482_v24 }
   0xe   :  { %1209 = vmatmul.mubr.msk.f32.gmra.mxu0 %vm32_vm0, %v19_v7 }
   0xf   :  { %1211 = vmatprep.mubr.msk.f32.mxu0 %vm32_vm0, %v20_v8 }
  0x12   :  { %1212 = vmatmul.mubr.msk.f32.gmra.mxu0 %vm32_vm0, %v21_v9 }
  0x13   :  { %1214 = vmatprep.mubr.msk.f32.mxu0 %vm32_vm0, %v22_v10 }
  0x16   :  { %1215 = vmatmul.mubr.msk.f32.gmra.mxu0 %vm32_vm0, %v23_v11 }
  0x17   :  { %1217 = vmatprep.mubr.msk.f32.mxu0 %vm32_vm0, %v24_v12 }
  0x1a   :  { %1218 = vmatmul.mubr.msk.f32.gmra.mxu0 %vm32_vm0, %v25_v13 }
  0x1b   :  { %1220 = vmatprep.mubr.msk.f32.mxu0 %vm32_vm0, %v26_v14 }
  0x1e   :  { %1221 = vmatmul.mubr.msk.f32.gmra.mxu0 %vm32_vm0, %v27_v15 }
  0x1f   :  { %1223 = vmatprep.mubr.msk.f32.mxu0 %vm32_vm0, %v28_v16 }
  0x22   :  { %1224 = vmatmul.mubr.msk.f32.gmra.mxu0 %vm32_vm0, %v29_v17 }
  0xc6   :  { %v1204_v18 = vpop.f32.mrf.mxu0 }
  0xc8   :  { %v147_v19 = vpop.f32.mrf.mxu0 }
  0xca   :  { %v1207_v20 = vpop.f32.mrf.mxu0 }
  0xcc   :  { %v157_v21 = vpop.f32.mrf.mxu0 }
  0xce   :  { %v1210_v23 = vpop.f32.mrf.mxu0 }
  0xd0   :  { %v167_v25 = vpop.f32.mrf.mxu0 }
  0xd1   :  { %290 = vxpose.xlu0.b32.start [1/2] (short) (narrow) %v167_v25, 32 }
  0xd2   :  { %v1213_v26 = vpop.f32.mrf.mxu0 }
  0xd4   :  { %v177_v27 = vpop.f32.mrf.mxu0 }
  0xd5   :  { %291 = vxpose.xlu0.b32.end [2/2] (short) (narrow) %v1210_v23, 32  ;;  %322 = vxpose.xlu1.b32.start [1/2] (short) (narrow) %v177_v27, 32 }
  0xd6   :  { %v1216_v28 = vpop.f32.mrf.mxu0 }
  0xd8   :  { %v187_v29 = vpop.f32.mrf.mxu0 }
  0xd9   :  { %323 = vxpose.xlu1.b32.end [2/2] (short) (narrow) %v1213_v26, 32 }
  0xda   :  { %v1219_v30 = vpop.f32.mrf.mxu0 }
  0xdc   :  { %v197_v31 = vpop.f32.mrf.mxu0 }
  0xde   :  { %354 = vxpose.xlu0.b32.start [1/2] (short) (narrow) %v187_v29, 32  ;;  %v1222_v32 = vpop.f32.mrf.mxu0 }
  0xe0   :  { %v207_v33 = vpop.f32.mrf.mxu0 }
  0xe2   :  { %355 = vxpose.xlu0.b32.end [2/2] (short) (narrow) %v1216_v28, 32  ;;  %386 = vxpose.xlu1.b32.start [1/2] (short) (narrow) %v197_v31, 32  ;;  %v1225_v34 = vpop.f32.mrf.mxu0 }
  0xe4   :  { %v217_v35 = vpop.f32.mrf.mxu0 }
  0xe6   :  { %387 = vxpose.xlu1.b32.end [2/2] (short) (narrow) %v1219_v30, 32 }
  0xeb   :  { %226 = vxpose.xlu0.b32.start [1/2] (short) (narrow) %v147_v19, 32 }
  0xef   :  { %227 = vxpose.xlu0.b32.end [2/2] (short) (narrow) %v1204_v18, 32  ;;  %418 = vxpose.xlu1.b32.start [1/2] (short) (narrow) %v207_v33, 32 }
  0xf3   :  { %419 = vxpose.xlu1.b32.end [2/2] (short) (narrow) %v1222_v32, 32 }
  0xf8   :  { %258 = vxpose.xlu0.b32.start [1/2] (short) (narrow) %v157_v21, 32 }
  0xfc   :  { %259 = vxpose.xlu0.b32.end [2/2] (short) (narrow) %v1207_v20, 32  ;;  %450 = vxpose.xlu1.b32.start [1/2] (short) (narrow) %v217_v35, 32 }
 0x100   :  { %451 = vxpose.xlu1.b32.end [2/2] (short) (narrow) %v1225_v34, 32 }
 0x14d   :  { %v306_v36 = vpop.trf.xlu0 }
 0x14e   :  { %1242 = vmatprep.mubr.msk.f32.mxu1 %vm32_vm0, %v306_v36 }
 0x151   :  { %v307_v37 = vpop.trf.xlu0  ;;  %v338_v38 = vpop.trf.xlu1 }
 0x152   :  { %1243 = vmatmul.mubr.msk.f32.vlgmr.msra.gmra.mxu1 %vm32_vm0, %v307_v37 }
 0x155   :  { %v308_v39 = vpop.trf.xlu0  ;;  %v339_v40 = vpop.trf.xlu1 }
 0x156   :  { %1245 = vmatprep.mubr.msk.f32.mxu1 %vm32_vm0, %v308_v39 }
 0x159   :  { %v309_v41 = vpop.trf.xlu0  ;;  %v340_v42 = vpop.trf.xlu1 }
 0x15a   :  { %1246 = vmatmul.mubr.msk.f32.gmra.mxu1 %vm32_vm0, %v309_v41 }
 0x15b   :  { %1248 = vmatprep.mubr.msk.f32.mxu1 %vm32_vm0, %v338_v38 }
 0x15d   :  { %v370_v43 = vpop.trf.xlu0  ;;  %v341_v44 = vpop.trf.xlu1 }
 0x15e   :  { %1249 = vmatmul.mubr.msk.f32.gmra.mxu1 %vm32_vm0, %v339_v40 }
 0x15f   :  { %1251 = vmatprep.mubr.msk.f32.mxu1 %vm32_vm0, %v340_v42 }
 0x161   :  { %v371_v45 = vpop.trf.xlu0  ;;  %v402_v46 = vpop.trf.xlu1 }
 0x162   :  { %1252 = vmatmul.mubr.msk.f32.gmra.mxu1 %vm32_vm0, %v341_v44 }
 0x163   :  { %1254 = vmatprep.mubr.msk.f32.mxu1 %vm32_vm0, %v370_v43 }
 0x165   :  { %v372_v47 = vpop.trf.xlu0  ;;  %v403_v48 = vpop.trf.xlu1 }
 0x166   :  { %1255 = vmatmul.mubr.msk.f32.gmra.mxu1 %vm32_vm0, %v371_v45 }
 0x167   :  { %1257 = vmatprep.mubr.msk.f32.mxu1 %vm32_vm0, %v372_v47 }
 0x169   :  { %v373_v49 = vpop.trf.xlu0  ;;  %v404_v50 = vpop.trf.xlu1 }
 0x16a   :  { %1258 = vmatmul.mubr.msk.f32.gmra.mxu1 %vm32_vm0, %v373_v49 }
 0x16b   :  { %1260 = vmatprep.mubr.msk.f32.mxu1 %vm32_vm0, %v402_v46 }
 0x16d   :  { %v242_v51 = vpop.trf.xlu0  ;;  %v405_v52 = vpop.trf.xlu1 }
 0x16e   :  { %1230 = vmatprep.mubr.msk.f32.mxu0 %vm32_vm0, %v242_v51  ;;  %1261 = vmatmul.mubr.msk.f32.gmra.mxu1 %vm32_vm0, %v403_v48 }
 0x16f   :  { %1263 = vmatprep.mubr.msk.f32.mxu1 %vm32_vm0, %v404_v50 }
 0x171   :  { %v243_v53 = vpop.trf.xlu0  ;;  %v434_v54 = vpop.trf.xlu1 }
 0x172   :  { %1231 = vmatmul.mubr.msk.f32.vlgmr.msra.gmra.mxu0 %vm32_vm0, %v243_v53  ;;  %1264 = vmatmul.mubr.msk.f32.gmra.mxu1 %vm32_vm0, %v405_v52 }
 0x173   :  { %1266 = vmatprep.mubr.msk.f32.mxu1 %vm32_vm0, %v434_v54 }
 0x175   :  { %v244_v55 = vpop.trf.xlu0  ;;  %v435_v56 = vpop.trf.xlu1 }
 0x176   :  { %1233 = vmatprep.mubr.msk.f32.mxu0 %vm32_vm0, %v244_v55  ;;  %1267 = vmatmul.mubr.msk.f32.gmra.mxu1 %vm32_vm0, %v435_v56 }
 0x179   :  { %v245_v57 = vpop.trf.xlu0  ;;  %v436_v58 = vpop.trf.xlu1 }
 0x17a   :  { %1234 = vmatmul.mubr.msk.f32.gmra.mxu0 %vm32_vm0, %v245_v57  ;;  %1269 = vmatprep.mubr.msk.f32.mxu1 %vm32_vm0, %v436_v58 }
 0x17d   :  { %v274_v59 = vpop.trf.xlu0  ;;  %v437_v60 = vpop.trf.xlu1 }
 0x17e   :  { %1236 = vmatprep.mubr.msk.f32.mxu0 %vm32_vm0, %v274_v59  ;;  %1270 = vmatmul.mubr.msk.f32.gmra.mxu1 %vm32_vm0, %v437_v60 }
 0x181   :  { %v275_v61 = vpop.trf.xlu0  ;;  %v466_v62 = vpop.trf.xlu1 }
 0x182   :  { %1237 = vmatmul.mubr.msk.f32.gmra.mxu0 %vm32_vm0, %v275_v61  ;;  %1272 = vmatprep.mubr.msk.f32.mxu1 %vm32_vm0, %v466_v62 }
 0x185   :  { %v276_v63 = vpop.trf.xlu0  ;;  %v467_v0 = vpop.trf.xlu1 }
 0x186   :  { %1239 = vmatprep.mubr.msk.f32.mxu0 %vm32_vm0, %v276_v63  ;;  %1273 = vmatmul.mubr.msk.f32.gmra.mxu1 %vm32_vm0, %v467_v0 }
 0x189   :  { %v277_v1 = vpop.trf.xlu0  ;;  %v468_v2 = vpop.trf.xlu1 }
 0x18a   :  { %1240 = vmatmul.mubr.msk.f32.gmra.mxu0 %vm32_vm0, %v277_v1  ;;  %1275 = vmatprep.mubr.msk.f32.mxu1 %vm32_vm0, %v468_v2 }
 0x18d   :  { %v469_v3 = vpop.trf.xlu1 }
 0x18e   :  { %1276 = vmatmul.mubr.msk.f32.gmra.mxu1 %vm32_vm0, %v469_v3 }
 0x212   :  { %v1244_v4 = vpop.f32.mrf.mxu1 }
 0x214   :  { %v686_v5 = vpop.f32.mrf.mxu1 }
 0x21a   :  { %v1247_v6 = vpop.f32.mrf.mxu1 }
 0x21c   :  { %v696_v7 = vpop.f32.mrf.mxu1 }
 0x21e   :  { %v1250_v10 = vpop.f32.mrf.mxu1 }
 0x220   :  { %v706_v11 = vpop.f32.mrf.mxu1 }
 0x222   :  { %v1253_v14 = vpop.f32.mrf.mxu1 }
 0x224   :  { %v716_v15 = vpop.f32.mrf.mxu1 }
 0x226   :  { %v1256_v18 = vpop.f32.mrf.mxu1 }
 0x228   :  { %v726_v19 = vpop.f32.mrf.mxu1 }
 0x22a   :  { %v1259_v22 = vpop.f32.mrf.mxu1 }
 0x22c   :  { %v736_v23 = vpop.f32.mrf.mxu1 }
 0x22e   :  { %v1262_v24 = vpop.f32.mrf.mxu1 }
 0x230   :  { %v746_v25 = vpop.f32.mrf.mxu1 }
 0x232   :  { %v1232_v8 = vpop.f32.mrf.mxu0  ;;  %v1265_v26 = vpop.f32.mrf.mxu1 }
 0x234   :  { %v646_v9 = vpop.f32.mrf.mxu0  ;;  %v756_v27 = vpop.f32.mrf.mxu1 }
 0x235   :  { %805 = vxpose.xlu0.b32.start [1/4] (short) (narrow) %v646_v9, 32 }
 0x236   :  { %v1268_v28 = vpop.f32.mrf.mxu1 }
 0x238   :  { %v766_v29 = vpop.f32.mrf.mxu1 }
 0x239   :  { %806 = vxpose.xlu0.b32.cont [2/4] (short) (narrow) %v1232_v8, 32 }
 0x23a   :  { %v1235_v12 = vpop.f32.mrf.mxu0 }
 0x23c   :  { %v656_v13 = vpop.f32.mrf.mxu0 }
 0x23d   :  { %807 = vxpose.xlu0.b32.cont [3/4] (short) (narrow) %v656_v13, 32 }
 0x23e   :  { %v1271_v30 = vpop.f32.mrf.mxu1 }
 0x240   :  { %v776_v31 = vpop.f32.mrf.mxu1 }
 0x241   :  { %808 = vxpose.xlu0.b32.end [4/4] (short) (narrow) %v1235_v12, 32 }
 0x242   :  { %v1238_v16 = vpop.f32.mrf.mxu0 }
 0x244   :  { %v666_v17 = vpop.f32.mrf.mxu0 }
 0x245   :  { %869 = vxpose.xlu0.b32.start [1/4] (short) (narrow) %v686_v5, 32  ;;  %837 = vxpose.xlu1.b32.start [1/4] (short) (narrow) %v666_v17, 32 }
 0x246   :  { %v1274_v32 = vpop.f32.mrf.mxu1 }
 0x248   :  { %v786_v33 = vpop.f32.mrf.mxu1 }
 0x249   :  { %870 = vxpose.xlu0.b32.cont [2/4] (short) (narrow) %v1244_v4, 32  ;;  %838 = vxpose.xlu1.b32.cont [2/4] (short) (narrow) %v1238_v16, 32 }
 0x24a   :  { %v1241_v20 = vpop.f32.mrf.mxu0 }
 0x24c   :  { %v676_v21 = vpop.f32.mrf.mxu0 }
 0x24d   :  { %871 = vxpose.xlu0.b32.cont [3/4] (short) (narrow) %v696_v7, 32  ;;  %839 = vxpose.xlu1.b32.cont [3/4] (short) (narrow) %v676_v21, 32 }
 0x24e   :  { %v1277_v34 = vpop.f32.mrf.mxu1 }
 0x250   :  { %v796_v35 = vpop.f32.mrf.mxu1 }
 0x251   :  { %872 = vxpose.xlu0.b32.end [4/4] (short) (narrow) %v1247_v6, 32  ;;  %840 = vxpose.xlu1.b32.end [4/4] (short) (narrow) %v1241_v20, 32 }
 0x255   :  { %933 = vxpose.xlu0.b32.start [1/4] (short) (narrow) %v726_v19, 32  ;;  %901 = vxpose.xlu1.b32.start [1/4] (short) (narrow) %v706_v11, 32 }
 0x259   :  { %934 = vxpose.xlu0.b32.cont [2/4] (short) (narrow) %v1256_v18, 32  ;;  %902 = vxpose.xlu1.b32.cont [2/4] (short) (narrow) %v1250_v10, 32 }
 0x25d   :  { %935 = vxpose.xlu0.b32.cont [3/4] (short) (narrow) %v736_v23, 32  ;;  %903 = vxpose.xlu1.b32.cont [3/4] (short) (narrow) %v716_v15, 32 }
 0x261   :  { %936 = vxpose.xlu0.b32.end [4/4] (short) (narrow) %v1259_v22, 32  ;;  %904 = vxpose.xlu1.b32.end [4/4] (short) (narrow) %v1253_v14, 32 }
 0x265   :  { %997 = vxpose.xlu0.b32.start [1/4] (short) (narrow) %v766_v29, 32  ;;  %965 = vxpose.xlu1.b32.start [1/4] (short) (narrow) %v746_v25, 32 }
 0x269   :  { %998 = vxpose.xlu0.b32.cont [2/4] (short) (narrow) %v1268_v28, 32  ;;  %966 = vxpose.xlu1.b32.cont [2/4] (short) (narrow) %v1262_v24, 32 }
 0x26d   :  { %999 = vxpose.xlu0.b32.cont [3/4] (short) (narrow) %v776_v31, 32  ;;  %967 = vxpose.xlu1.b32.cont [3/4] (short) (narrow) %v756_v27, 32 }
 0x271   :  { %1000 = vxpose.xlu0.b32.end [4/4] (short) (narrow) %v1271_v30, 32  ;;  %968 = vxpose.xlu1.b32.end [4/4] (short) (narrow) %v1265_v26, 32 }
 0x275   :  { %1029 = vxpose.xlu1.b32.start [1/4] (short) (narrow) %v786_v33, 32 }
 0x279   :  { %1030 = vxpose.xlu1.b32.cont [2/4] (short) (narrow) %v1274_v32, 32 }
 0x27d   :  { %1031 = vxpose.xlu1.b32.cont [3/4] (short) (narrow) %v796_v35, 32 }
 0x281   :  { %1032 = vxpose.xlu1.b32.end [4/4] (short) (narrow) %v1277_v34, 32 }
 0x2b1   :  { %v821_v36 = vpop.trf.xlu0 }
 0x2b2   :  { %1062 = vst.msk [vmem:[%s1542_s3] sm:$0xff] %vm1061_vm1, %v821_v36 }
 0x2b5   :  { %v822_v37 = vpop.trf.xlu0 }
 0x2b6   :  { %1063 = vst.msk [vmem:[%s1542_s3 + $0x8] sm:$0xff] %vm1061_vm1, %v822_v37 }
 0x2b9   :  { %v823_v38 = vpop.trf.xlu0 }
 0x2ba   :  { %1064 = vst.msk [vmem:[%s1542_s3 + $0x10] sm:$0xff] %vm1061_vm1, %v823_v38 }
 0x2bd   :  { %v824_v39 = vpop.trf.xlu0 }
 0x2be   :  { %1065 = vst.msk [vmem:[%s1542_s3 + $0x18] sm:$0xff] %vm1061_vm1, %v824_v39 }
 0x2c1   :  { %v853_v40 = vpop.trf.xlu1  ;;  %v885_v41 = vpop.trf.xlu0 }
 0x2c2   :  { %1066 = vst.msk [vmem:[%s1542_s3 + $0x20] sm:$0xff] %vm1061_vm1, %v853_v40  ;;  %1070 = vst.msk [vmem:[%s1542_s3 + $0x40] sm:$0xff] %vm1061_vm1, %v885_v41 }
 0x2c5   :  { %v854_v42 = vpop.trf.xlu1  ;;  %v886_v43 = vpop.trf.xlu0 }
 0x2c6   :  { %1067 = vst.msk [vmem:[%s1542_s3 + $0x28] sm:$0xff] %vm1061_vm1, %v854_v42  ;;  %1071 = vst.msk [vmem:[%s1542_s3 + $0x48] sm:$0xff] %vm1061_vm1, %v886_v43 }
 0x2c9   :  { %v855_v44 = vpop.trf.xlu1  ;;  %v887_v45 = vpop.trf.xlu0 }
 0x2ca   :  { %1068 = vst.msk [vmem:[%s1542_s3 + $0x30] sm:$0xff] %vm1061_vm1, %v855_v44  ;;  %1072 = vst.msk [vmem:[%s1542_s3 + $0x50] sm:$0xff] %vm1061_vm1, %v887_v45 }
 0x2cd   :  { %v856_v46 = vpop.trf.xlu1  ;;  %v888_v47 = vpop.trf.xlu0 }
 0x2ce   :  { %1069 = vst.msk [vmem:[%s1542_s3 + $0x38] sm:$0xff] %vm1061_vm1, %v856_v46  ;;  %1073 = vst.msk [vmem:[%s1542_s3 + $0x58] sm:$0xff] %vm1061_vm1, %v888_v47 }
 0x2d1   :  { %v917_v48 = vpop.trf.xlu1  ;;  %v949_v49 = vpop.trf.xlu0 }
 0x2d2   :  { %1074 = vst.msk [vmem:[%s1542_s3 + $0x60] sm:$0xff] %vm1061_vm1, %v917_v48  ;;  %1078 = vst.msk [vmem:[%s1542_s3 + $0x80] sm:$0xff] %vm1061_vm1, %v949_v49 }
 0x2d5   :  { %v918_v50 = vpop.trf.xlu1  ;;  %v950_v51 = vpop.trf.xlu0 }
 0x2d6   :  { %1075 = vst.msk [vmem:[%s1542_s3 + $0x68] sm:$0xff] %vm1061_vm1, %v918_v50  ;;  %1079 = vst.msk [vmem:[%s1542_s3 + $0x88] sm:$0xff] %vm1061_vm1, %v950_v51 }
 0x2d9   :  { %v919_v52 = vpop.trf.xlu1  ;;  %v951_v53 = vpop.trf.xlu0 }
 0x2da   :  { %1076 = vst.msk [vmem:[%s1542_s3 + $0x70] sm:$0xff] %vm1061_vm1, %v919_v52  ;;  %1080 = vst.msk [vmem:[%s1542_s3 + $0x90] sm:$0xff] %vm1061_vm1, %v951_v53 }
 0x2dd   :  { %v920_v54 = vpop.trf.xlu1  ;;  %v952_v55 = vpop.trf.xlu0 }
 0x2de   :  { %1077 = vst.msk [vmem:[%s1542_s3 + $0x78] sm:$0xff] %vm1061_vm1, %v920_v54  ;;  %1081 = vst.msk [vmem:[%s1542_s3 + $0x98] sm:$0xff] %vm1061_vm1, %v952_v55 }
 0x2e1   :  { %v981_v56 = vpop.trf.xlu1  ;;  %v1013_v57 = vpop.trf.xlu0 }
 0x2e2   :  { %1082 = vst.msk [vmem:[%s1542_s3 + $0xa0] sm:$0xff] %vm1061_vm1, %v981_v56  ;;  %1086 = vst.msk [vmem:[%s1542_s3 + $0xc0] sm:$0xff] %vm1061_vm1, %v1013_v57 }
 0x2e5   :  { %v982_v58 = vpop.trf.xlu1  ;;  %v1014_v59 = vpop.trf.xlu0 }
 0x2e6   :  { %1083 = vst.msk [vmem:[%s1542_s3 + $0xa8] sm:$0xff] %vm1061_vm1, %v982_v58  ;;  %1087 = vst.msk [vmem:[%s1542_s3 + $0xc8] sm:$0xff] %vm1061_vm1, %v1014_v59 }
 0x2e9   :  { %v983_v60 = vpop.trf.xlu1  ;;  %v1015_v61 = vpop.trf.xlu0 }
 0x2ea   :  { %1084 = vst.msk [vmem:[%s1542_s3 + $0xb0] sm:$0xff] %vm1061_vm1, %v983_v60  ;;  %1088 = vst.msk [vmem:[%s1542_s3 + $0xd0] sm:$0xff] %vm1061_vm1, %v1015_v61 }
 0x2ed   :  { %v984_v62 = vpop.trf.xlu1  ;;  %v1016_v63 = vpop.trf.xlu0 }
 0x2ee   :  { %1085 = vst.msk [vmem:[%s1542_s3 + $0xb8] sm:$0xff] %vm1061_vm1, %v984_v62  ;;  %1089 = vst.msk [vmem:[%s1542_s3 + $0xd8] sm:$0xff] %vm1061_vm1, %v1016_v63 }
 0x2f1   :  { %v1045_v0 = vpop.trf.xlu1 }
 0x2f2   :  { %1090 = vst.msk [vmem:[%s1542_s3 + $0xe0] sm:$0xff] %vm1061_vm1, %v1045_v0 }
 0x2f5   :  { %v1046_v1 = vpop.trf.xlu1 }
 0x2f6   :  { %1091 = vst.msk [vmem:[%s1542_s3 + $0xe8] sm:$0xff] %vm1061_vm1, %v1046_v1 }
 0x2f9   :  { %v1047_v2 = vpop.trf.xlu1 }
 0x2fa   :  { %1092 = vst.msk [vmem:[%s1542_s3 + $0xf0] sm:$0xff] %vm1061_vm1, %v1047_v2 }
 0x2fd   :  { %v1048_v3 = vpop.trf.xlu1 }
 0x2fe   :  { %1093 = vst.msk [vmem:[%s1542_s3 + $0xf8] sm:$0xff] %vm1061_vm1, %v1048_v3 }

// kernel: tpu_custom_call.1
= control target key start
LH: loop header
LB: loop body
LE: loop exit
PB: predicated region body
PF: predicated region fallthrough
CT: control target
= control target key end

     0   :  { %vm32_vm0 = vcmask 130048   ;;  %vm952_vm1 = vcmask 261120   ;;  %s1508_s1 = inlined_call_operand.vmem [shape: f32[16,32], index: 1, kind: input, shape index: {}]   ;;  %s1509_s0 = inlined_call_operand.vmem [shape: f32[128,16], index: 0, kind: input, shape index: {}]   ;;  %s1510_s2 = inlined_call_operand.vmem [shape: f32[16,32], index: 2, kind: input, shape index: {}]   ;;  %s1511_s3 = inlined_call_operand.vmem [shape: f32[256,32], index: 3, kind: output, shape index: {}]  }
   0x1   :  { %v31_v0 = vld [vmem:[%s1508_s1 + $0x8] sm:$0xff]  ;;  %v30_v1 = vld [vmem:[%s1508_s1] sm:$0xff]  ;;  %v16_v4 = vld [vmem:[%s1509_s0 + $0x10] sm:$0xff] }
   0x2   :  { %v14_v2 = vld [vmem:[%s1509_s0] sm:$0xff]  ;;  %1103 = vmatprep.subr.mxu0 %v31_v0  ;;  %v15_v3 = vld [vmem:[%s1509_s0 + $0x8] sm:$0xff]  ;;  %v17_v5 = vld [vmem:[%s1509_s0 + $0x18] sm:$0xff] }
   0x3   :  { %1107 = vmatprep.mubr.msk.f32.mxu0 %vm32_vm0, %v14_v2  ;;  %1104 = vmatpush3.msra.mxu0 %v31_v0  ;;  %v226_v6 = vld [vmem:[%s1510_s2] sm:$0xff]  ;;  %v227_v8 = vld [vmem:[%s1510_s2 + $0x8] sm:$0xff]  ;;  %v20_v10 = vld [vmem:[%s1509_s0 + $0x30] sm:$0xff] }
   0x4   :  { %1105 = vmatprep.subr.mxu0 %v30_v1  ;;  %v18_v7 = vld [vmem:[%s1509_s0 + $0x20] sm:$0xff]  ;;  %228 = vxpose.xlu0.b32.start [1/2] (short) (narrow) %v226_v6, 32  ;;  %v19_v9 = vld [vmem:[%s1509_s0 + $0x28] sm:$0xff]  ;;  %v21_v11 = vld [vmem:[%s1509_s0 + $0x38] sm:$0xff] }
   0x5   :  { %1106 = vmatpush3.msra.mxu0 %v30_v1  ;;  %v22_v12 = vld [vmem:[%s1509_s0 + $0x40] sm:$0xff]  ;;  %v23_v13 = vld [vmem:[%s1509_s0 + $0x48] sm:$0xff]  ;;  %v24_v14 = vld [vmem:[%s1509_s0 + $0x50] sm:$0xff] }
   0x6   :  { %1108 = vmatmul.mubr.msk.f32.vlgmr.msra.gmra.mxu0 %vm32_vm0, %v15_v3  ;;  %v25_v15 = vld [vmem:[%s1509_s0 + $0x58] sm:$0xff]  ;;  %v26_v16 = vld [vmem:[%s1509_s0 + $0x60] sm:$0xff]  ;;  %v27_v17 = vld [vmem:[%s1509_s0 + $0x68] sm:$0xff] }
   0x7   :  { %1110 = vmatprep.mubr.msk.f32.mxu0 %vm32_vm0, %v16_v4  ;;  %v28_v18 = vld [vmem:[%s1509_s0 + $0x70] sm:$0xff]  ;;  %v29_v19 = vld [vmem:[%s1509_s0 + $0x78] sm:$0xff] }
   0x8   :  { %229 = vxpose.xlu0.b32.end [2/2] (short) (narrow) %v227_v8, 32 }
   0xa   :  { %1111 = vmatmul.mubr.msk.f32.gmra.mxu0 %vm32_vm0, %v17_v5 }
   0xb   :  { %1113 = vmatprep.mubr.msk.f32.mxu0 %vm32_vm0, %v18_v7 }
   0xe   :  { %1114 = vmatmul.mubr.msk.f32.gmra.mxu0 %vm32_vm0, %v19_v9 }
   0xf   :  { %1116 = vmatprep.mubr.msk.f32.mxu0 %vm32_vm0, %v20_v10 }
  0x12   :  { %1117 = vmatmul.mubr.msk.f32.gmra.mxu0 %vm32_vm0, %v21_v11 }
  0x13   :  { %1119 = vmatprep.mubr.msk.f32.mxu0 %vm32_vm0, %v22_v12 }
  0x16   :  { %1120 = vmatmul.mubr.msk.f32.gmra.mxu0 %vm32_vm0, %v23_v13 }
  0x17   :  { %1122 = vmatprep.mubr.msk.f32.mxu0 %vm32_vm0, %v24_v14 }
  0x1a   :  { %1123 = vmatmul.mubr.msk.f32.gmra.mxu0 %vm32_vm0, %v25_v15 }
  0x1b   :  { %1125 = vmatprep.mubr.msk.f32.mxu0 %vm32_vm0, %v26_v16 }
  0x1e   :  { %1126 = vmatmul.mubr.msk.f32.gmra.mxu0 %vm32_vm0, %v27_v17 }
  0x1f   :  { %1128 = vmatprep.mubr.msk.f32.mxu0 %vm32_vm0, %v28_v18 }
  0x22   :  { %1129 = vmatmul.mubr.msk.f32.gmra.mxu0 %vm32_vm0, %v29_v19 }
  0x80   :  { %v1308_v20 = vpop.trf.xlu0 }
  0x81   :  { %1135 = vmatprep.mubr.msk.f32.mxu1 %vm32_vm0, %v1308_v20  ;;  %1175 = vmatprep.mubr.msk.f32.mxu0 %vm32_vm0, %v1308_v20 }
  0x84   :  { %v1314_v21 = vpop.trf.xlu0 }
  0x88   :  { %v1316_v23 = vpop.trf.xlu0 }
  0x8c   :  { %v1320_v27 = vpop.trf.xlu0 }
  0xc6   :  { %v1109_v22 = vpop.f32.mrf.mxu0 }
  0xc7   :  { %1131 = vmatprep.subr.mxu1 %v1109_v22 }
  0xc8   :  { %v147_v24 = vpop.f32.mrf.mxu0  ;;  %1132 = vmatpush3.msra.mxu1 %v1109_v22 }
  0xc9   :  { %1133 = vmatprep.subr.mxu1 %v147_v24 }
  0xca   :  { %v1112_v25 = vpop.f32.mrf.mxu0  ;;  %1134 = vmatpush3.msra.mxu1 %v147_v24 }
  0xcb   :  { %1136 = vmatmul.mubr.msk.f32.vlgmr.msra.gmra.mxu1 %vm32_vm0, %v1314_v21  ;;  %1141 = vmatprep.subr.mxu1 %v1112_v25 }
  0xcc   :  { %v157_v26 = vpop.f32.mrf.mxu0  ;;  %1142 = vmatpush3.msra.mxu1 %v1112_v25  ;;  %1138 = vmatprep.mubr.msk.f32.mxu1 %vm32_vm0, %v1316_v23 }
  0xcd   :  { %1143 = vmatprep.subr.mxu1 %v157_v26 }
  0xce   :  { %v1115_v28 = vpop.f32.mrf.mxu0  ;;  %1144 = vmatpush3.msra.mxu1 %v157_v26 }
  0xcf   :  { %1139 = vmatmul.mubr.msk.f32.gmra.mxu1 %vm32_vm0, %v1320_v27  ;;  %1151 = vmatprep.subr.mxu1 %v1115_v28 }
  0xd0   :  { %v167_v29 = vpop.f32.mrf.mxu0  ;;  %1145 = vmatprep.mubr.msk.f32.mxu1 %vm32_vm0, %v1308_v20 }
  0xd2   :  { %v1118_v30 = vpop.f32.mrf.mxu0 }
  0xd3   :  { %1146 = vmatmul.mubr.msk.f32.vlgmr.msra.gmra.mxu1 %vm32_vm0, %v1314_v21 }
  0xd4   :  { %1152 = vmatpush3.msra.mxu1 %v1115_v28  ;;  %v177_v31 = vpop.f32.mrf.mxu0  ;;  %1148 = vmatprep.mubr.msk.f32.mxu1 %vm32_vm0, %v1316_v23 }
  0xd5   :  { %1153 = vmatprep.subr.mxu1 %v167_v29 }
  0xd6   :  { %1154 = vmatpush3.msra.mxu1 %v167_v29  ;;  %v1121_v32 = vpop.f32.mrf.mxu0 }
  0xd7   :  { %1161 = vmatprep.subr.mxu1 %v1118_v30  ;;  %1149 = vmatmul.mubr.msk.f32.gmra.mxu1 %vm32_vm0, %v1320_v27 }
  0xd8   :  { %1171 = vmatprep.subr.mxu0 %v1121_v32  ;;  %v187_v33 = vpop.f32.mrf.mxu0  ;;  %1155 = vmatprep.mubr.msk.f32.mxu1 %vm32_vm0, %v1308_v20 }
  0xd9   :  { %1172 = vmatpush3.msra.mxu0 %v1121_v32 }
  0xda   :  { %1173 = vmatprep.subr.mxu0 %v187_v33  ;;  %v1124_v34 = vpop.f32.mrf.mxu0 }
  0xdb   :  { %1174 = vmatpush3.msra.mxu0 %v187_v33  ;;  %1156 = vmatmul.mubr.msk.f32.vlgmr.msra.gmra.mxu1 %vm32_vm0, %v1314_v21 }
  0xdc   :  { %1162 = vmatpush3.msra.mxu1 %v1118_v30  ;;  %1176 = vmatmul.mubr.msk.f32.vlgmr.msra.gmra.mxu0 %vm32_vm0, %v1314_v21  ;;  %v197_v35 = vpop.f32.mrf.mxu0 }
  0xdd   :  { %1158 = vmatprep.mubr.msk.f32.mxu1 %vm32_vm0, %v1316_v23  ;;  %1163 = vmatprep.subr.mxu1 %v177_v31 }
  0xde   :  { %1178 = vmatprep.mubr.msk.f32.mxu0 %vm32_vm0, %v1316_v23  ;;  %1164 = vmatpush3.msra.mxu1 %v177_v31  ;;  %v1127_v36 = vpop.f32.mrf.mxu0 }
  0xdf   :  { %1159 = vmatmul.mubr.msk.f32.gmra.mxu1 %vm32_vm0, %v1320_v27  ;;  %1191 = vmatprep.subr.mxu0 %v1127_v36 }
  0xe0   :  { %1179 = vmatmul.mubr.msk.f32.gmra.mxu0 %vm32_vm0, %v1320_v27  ;;  %v207_v37 = vpop.f32.mrf.mxu0  ;;  %1165 = vmatprep.mubr.msk.f32.mxu1 %vm32_vm0, %v1308_v20 }
  0xe1   :  { %1192 = vmatpush3.msra.mxu0 %v1127_v36  ;;  %1195 = vmatprep.mubr.msk.f32.mxu0 %vm32_vm0, %v1308_v20 }
  0xe2   :  { %1193 = vmatprep.subr.mxu0 %v207_v37  ;;  %1181 = vmatprep.subr.mxu1 %v1124_v34  ;;  %v1130_v38 = vpop.f32.mrf.mxu0 }
  0xe3   :  { %1194 = vmatpush3.msra.mxu0 %v207_v37  ;;  %1166 = vmatmul.mubr.msk.f32.vlgmr.msra.gmra.mxu1 %vm32_vm0, %v1314_v21 }
  0xe4   :  { %1196 = vmatmul.mubr.msk.f32.vlgmr.msra.gmra.mxu0 %vm32_vm0, %v1314_v21  ;;  %1168 = vmatprep.mubr.msk.f32.mxu1 %vm32_vm0, %v1316_v23  ;;  %v217_v39 = vpop.f32.mrf.mxu0 }
  0xe5   :  { %1198 = vmatprep.mubr.msk.f32.mxu0 %vm32_vm0, %v1316_v23  ;;  %1182 = vmatpush3.msra.mxu1 %v1124_v34 }
  0xe6   :  { %1183 = vmatprep.subr.mxu1 %v197_v35 }
  0xe7   :  { %1169 = vmatmul.mubr.msk.f32.gmra.mxu1 %vm32_vm0, %v1320_v27 }
  0xe8   :  { %1199 = vmatmul.mubr.msk.f32.gmra.mxu0 %vm32_vm0, %v1320_v27  ;;  %1185 = vmatprep.mubr.msk.f32.mxu1 %vm32_vm0, %v1308_v20 }
  0xe9   :  { %1184 = vmatpush3.msra.mxu1 %v197_v35 }
  0xea   :  { %1201 = vmatprep.subr.mxu1 %v1130_v38 }
  0xeb   :  { %1186 = vmatmul.mubr.msk.f32.vlgmr.msra.gmra.mxu1 %vm32_vm0, %v1314_v21 }
  0xec   :  { %1188 = vmatprep.mubr.msk.f32.mxu1 %vm32_vm0, %v1316_v23  ;;  %1202 = vmatpush3.msra.mxu1 %v1130_v38 }
  0xed   :  { %1203 = vmatprep.subr.mxu1 %v217_v39 }
  0xee   :  { %1204 = vmatpush3.msra.mxu1 %v217_v39 }
  0xef   :  { %1189 = vmatmul.mubr.msk.f32.gmra.mxu1 %vm32_vm0, %v1320_v27 }
  0xf0   :  { %1205 = vmatprep.mubr.msk.f32.mxu1 %vm32_vm0, %v1308_v20 }
  0xf3   :  { %1206 = vmatmul.mubr.msk.f32.vlgmr.msra.gmra.mxu1 %vm32_vm0, %v1314_v21 }
  0xf4   :  { %1208 = vmatprep.mubr.msk.f32.mxu1 %vm32_vm0, %v1316_v23 }
  0xf7   :  { %1209 = vmatmul.mubr.msk.f32.gmra.mxu1 %vm32_vm0, %v1320_v27 }
 0x18b   :  { %v1137_v40 = vpop.f32.mrf.mxu1 }
 0x18c   :  { %954 = vst.msk [vmem:[%s1511_s3 + $0x8] sm:$0xff] %vm952_vm1, %v1137_v40 }
 0x18d   :  { %v338_v41 = vpop.f32.mrf.mxu1 }
 0x18e   :  { %953 = vst.msk [vmem:[%s1511_s3] sm:$0xff] %vm952_vm1, %v338_v41 }
 0x18f   :  { %v1140_v42 = vpop.f32.mrf.mxu1 }
 0x190   :  { %956 = vst.msk [vmem:[%s1511_s3 + $0x18] sm:$0xff] %vm952_vm1, %v1140_v42 }
 0x191   :  { %v348_v43 = vpop.f32.mrf.mxu1 }
 0x192   :  { %955 = vst.msk [vmem:[%s1511_s3 + $0x10] sm:$0xff] %vm952_vm1, %v348_v43 }
 0x193   :  { %v1147_v44 = vpop.f32.mrf.mxu1 }
 0x194   :  { %958 = vst.msk [vmem:[%s1511_s3 + $0x28] sm:$0xff] %vm952_vm1, %v1147_v44 }
 0x195   :  { %v423_v45 = vpop.f32.mrf.mxu1 }
 0x196   :  { %957 = vst.msk [vmem:[%s1511_s3 + $0x20] sm:$0xff] %vm952_vm1, %v423_v45 }
 0x197   :  { %v1150_v46 = vpop.f32.mrf.mxu1 }
 0x198   :  { %960 = vst.msk [vmem:[%s1511_s3 + $0x38] sm:$0xff] %vm952_vm1, %v1150_v46 }
 0x199   :  { %v433_v47 = vpop.f32.mrf.mxu1 }
 0x19a   :  { %959 = vst.msk [vmem:[%s1511_s3 + $0x30] sm:$0xff] %vm952_vm1, %v433_v47 }
 0x19b   :  { %v1157_v48 = vpop.f32.mrf.mxu1 }
 0x19c   :  { %962 = vst.msk [vmem:[%s1511_s3 + $0x48] sm:$0xff] %vm952_vm1, %v1157_v48  ;;  %v1177_v49 = vpop.f32.mrf.mxu0 }
 0x19d   :  { %970 = vst.msk [vmem:[%s1511_s3 + $0x88] sm:$0xff] %vm952_vm1, %v1177_v49  ;;  %v508_v50 = vpop.f32.mrf.mxu1 }
 0x19e   :  { %961 = vst.msk [vmem:[%s1511_s3 + $0x40] sm:$0xff] %vm952_vm1, %v508_v50  ;;  %v678_v51 = vpop.f32.mrf.mxu0 }
 0x19f   :  { %969 = vst.msk [vmem:[%s1511_s3 + $0x80] sm:$0xff] %vm952_vm1, %v678_v51  ;;  %v1160_v52 = vpop.f32.mrf.mxu1 }
 0x1a0   :  { %964 = vst.msk [vmem:[%s1511_s3 + $0x58] sm:$0xff] %vm952_vm1, %v1160_v52  ;;  %v1180_v53 = vpop.f32.mrf.mxu0 }
 0x1a1   :  { %972 = vst.msk [vmem:[%s1511_s3 + $0x98] sm:$0xff] %vm952_vm1, %v1180_v53  ;;  %v518_v54 = vpop.f32.mrf.mxu1 }
 0x1a2   :  { %963 = vst.msk [vmem:[%s1511_s3 + $0x50] sm:$0xff] %vm952_vm1, %v518_v54  ;;  %v688_v55 = vpop.f32.mrf.mxu0 }
 0x1a3   :  { %971 = vst.msk [vmem:[%s1511_s3 + $0x90] sm:$0xff] %vm952_vm1, %v688_v55  ;;  %v1167_v56 = vpop.f32.mrf.mxu1 }
 0x1a4   :  { %966 = vst.msk [vmem:[%s1511_s3 + $0x68] sm:$0xff] %vm952_vm1, %v1167_v56  ;;  %v1197_v57 = vpop.f32.mrf.mxu0 }
 0x1a5   :  { %978 = vst.msk [vmem:[%s1511_s3 + $0xc8] sm:$0xff] %vm952_vm1, %v1197_v57  ;;  %v593_v58 = vpop.f32.mrf.mxu1 }
 0x1a6   :  { %965 = vst.msk [vmem:[%s1511_s3 + $0x60] sm:$0xff] %vm952_vm1, %v593_v58  ;;  %v848_v59 = vpop.f32.mrf.mxu0 }
 0x1a7   :  { %977 = vst.msk [vmem:[%s1511_s3 + $0xc0] sm:$0xff] %vm952_vm1, %v848_v59  ;;  %v1170_v60 = vpop.f32.mrf.mxu1 }
 0x1a8   :  { %968 = vst.msk [vmem:[%s1511_s3 + $0x78] sm:$0xff] %vm952_vm1, %v1170_v60  ;;  %v1200_v61 = vpop.f32.mrf.mxu0 }
 0x1a9   :  { %980 = vst.msk [vmem:[%s1511_s3 + $0xd8] sm:$0xff] %vm952_vm1, %v1200_v61  ;;  %v603_v62 = vpop.f32.mrf.mxu1 }
 0x1aa   :  { %967 = vst.msk [vmem:[%s1511_s3 + $0x70] sm:$0xff] %vm952_vm1, %v603_v62  ;;  %v858_v63 = vpop.f32.mrf.mxu0 }
 0x1ab   :  { %979 = vst.msk [vmem:[%s1511_s3 + $0xd0] sm:$0xff] %vm952_vm1, %v858_v63  ;;  %v1187_v0 = vpop.f32.mrf.mxu1 }
 0x1ac   :  { %974 = vst.msk [vmem:[%s1511_s3 + $0xa8] sm:$0xff] %vm952_vm1, %v1187_v0 }
 0x1ad   :  { %v763_v1 = vpop.f32.mrf.mxu1 }
 0x1ae   :  { %973 = vst.msk [vmem:[%s1511_s3 + $0xa0] sm:$0xff] %vm952_vm1, %v763_v1 }
 0x1af   :  { %v1190_v2 = vpop.f32.mrf.mxu1 }
 0x1b0   :  { %976 = vst.msk [vmem:[%s1511_s3 + $0xb8] sm:$0xff] %vm952_vm1, %v1190_v2 }
 0x1b1   :  { %v773_v3 = vpop.f32.mrf.mxu1 }
 0x1b2   :  { %975 = vst.msk [vmem:[%s1511_s3 + $0xb0] sm:$0xff] %vm952_vm1, %v773_v3 }
 0x1b3   :  { %v1207_v4 = vpop.f32.mrf.mxu1 }
 0x1b4   :  { %982 = vst.msk [vmem:[%s1511_s3 + $0xe8] sm:$0xff] %vm952_vm1, %v1207_v4 }
 0x1b5   :  { %v933_v5 = vpop.f32.mrf.mxu1 }
 0x1b6   :  { %981 = vst.msk [vmem:[%s1511_s3 + $0xe0] sm:$0xff] %vm952_vm1, %v933_v5 }
 0x1b7   :  { %v1210_v6 = vpop.f32.mrf.mxu1 }
 0x1b8   :  { %984 = vst.msk [vmem:[%s1511_s3 + $0xf8] sm:$0xff] %vm952_vm1, %v1210_v6 }
 0x1b9   :  { %v943_v7 = vpop.f32.mrf.mxu1 }
 0x1ba   :  { %983 = vst.msk [vmem:[%s1511_s3 + $0xf0] sm:$0xff] %vm952_vm1, %v943_v7 }

</bundles_post_ra>
